<compile_context>
chip_gen: v7x
topology: tpu7x:2x2x1
jax: 0.10.0
libtpu: 0.0.40
codegen_flags: <defaults>
</compile_context>

<pallas_src>
import jax
import jax.numpy as jnp
from jax.experimental import pallas as pl
from jax.experimental.pallas import tpu as pltpu


# -------------------- model dimensions (small, synthetic) --------------------
B = 2            # batch
C = 3            # image channels (CLIP uses RGB)
H = W = 16       # spatial
PATCH = 8        # patch size -> P = (16/8)^2 = 4 patches
P = (H // PATCH) * (W // PATCH)
D_PATCH = C * PATCH * PATCH          # 192, flattened-patch feature dim
WIDTH = 64                           # encoder hidden width
OUTPUT_DIM = 32                      # model.visual.output_dim
NUM_CLASSES = 10                     # len(subclasses)

TILE_B = 8                           # batch tile (multiple of 8 sublanes)
NUM_CLASSES_PAD = 128                # lane-dense padded class dim


# ------------------------------- Pallas kernel --------------------------------
def clip_finetuner_kernel(patches_ref,   # [TILE_B, P, D_PATCH]  image patches
                          we_ref,        # [D_PATCH, WIDTH]      patch-embed weight
                          be_ref,        # [1, WIDTH]            patch-embed bias
                          gamma_ref,     # [1, WIDTH]            layernorm scale
                          beta_ref,      # [1, WIDTH]            layernorm shift
                          wf_ref,        # [WIDTH, NUM_CLASSES_PAD] fused wp @ wc^T (zero-padded)
                          bc_ref,        # [1, NUM_CLASSES_PAD]  classifier bias (zero-padded)
                          out_ref):      # [TILE_B, NUM_CLASSES_PAD] logits (float32)
    # ---- frozen encode_image (torch.no_grad() branch) ----
    # Pool BEFORE the embedding matmul: mean_p(X) @ We == mean_p(X @ We)
    pooled = jnp.mean(patches_ref[...], axis=1)                      # [TILE_B, D_PATCH]

    # patch embedding: [TILE_B, D_PATCH] x [D_PATCH, WIDTH] (single 2-D MXU dot)
    emb = jnp.dot(pooled, we_ref[...],
                  preferred_element_type=jnp.float32) + be_ref[...]  # [TILE_B, WIDTH]

    # LayerNorm over the feature axis (rsqrt -> EUP slot)
    mu = jnp.mean(emb, axis=-1, keepdims=True)
    var = jnp.mean((emb - mu) ** 2, axis=-1, keepdims=True)
    normed = (emb - mu) * jax.lax.rsqrt(var + 1e-5)
    normed = normed * gamma_ref[...] + beta_ref[...]

    # ---- fused (visual projection @ classifier) + bias ----
    # features = normed @ wp  (float32);  logits = features @ wc^T + bc
    # collapses to: logits = normed @ (wp @ wc^T) + bc
    logits = jnp.dot(normed, wf_ref[...],
                     preferred_element_type=jnp.float32) + bc_ref[...]
    out_ref[...] = logits.astype(out_ref.dtype)                      # full-lane store


# --------------------------------- wrapper ------------------------------------
def clip_finetuner_forward(x, params):
    """x: [B, C, H, W] float32 (NCHW). Returns logits [B, NUM_CLASSES] float32."""
    b, c, h, w = x.shape
    gh, gw = h // PATCH, w // PATCH
    # NCHW -> [B, gh, gw, C, ph, pw] -> [B, P, C*ph*pw]   (glue only: reshape/transpose)
    patches = x.reshape(b, c, gh, PATCH, gw, PATCH)
    patches = patches.transpose(0, 2, 4, 1, 3, 5).reshape(b, gh * gw, c * PATCH * PATCH)

    # pad batch up to a multiple of TILE_B (padded rows sliced away at the end)
    b_pad = pl.cdiv(b, TILE_B) * TILE_B
    if b_pad != b:
        patches = jnp.pad(patches, ((0, b_pad - b), (0, 0), (0, 0)))

    # fuse frozen projection with trainable classifier, pad classes to 128 lanes
    w_fused = jnp.dot(params["wp"], params["wc"].T)                  # [WIDTH, NUM_CLASSES]
    w_fused = jnp.pad(w_fused, ((0, 0), (0, NUM_CLASSES_PAD - NUM_CLASSES)))
    bc_pad = jnp.pad(params["bc"], (0, NUM_CLASSES_PAD - NUM_CLASSES))
    bc_pad = bc_pad.reshape(1, NUM_CLASSES_PAD)

    inputs = (
        patches,                                  # [b_pad, P, D_PATCH]
        params["we"],                             # [D_PATCH, WIDTH]
        params["be"].reshape(1, WIDTH),
        params["gamma"].reshape(1, WIDTH),
        params["beta"].reshape(1, WIDTH),
        w_fused,                                  # [WIDTH, NUM_CLASSES_PAD]
        bc_pad,                                   # [1, NUM_CLASSES_PAD]
    )

    out = pl.pallas_call(
        clip_finetuner_kernel,
        out_shape=jax.ShapeDtypeStruct((b_pad, NUM_CLASSES_PAD), jnp.float32),
        grid_spec=pltpu.PrefetchScalarGridSpec(
            num_scalar_prefetch=0,
            grid=(b_pad // TILE_B,),
            in_specs=[
                pl.BlockSpec((TILE_B, P, D_PATCH), lambda i: (i, 0, 0)),
                # small parameters: replicated, DMA'd once and kept resident
                pl.BlockSpec((D_PATCH, WIDTH), lambda i: (0, 0)),
                pl.BlockSpec((1, WIDTH), lambda i: (0, 0)),
                pl.BlockSpec((1, WIDTH), lambda i: (0, 0)),
                pl.BlockSpec((1, WIDTH), lambda i: (0, 0)),
                pl.BlockSpec((WIDTH, NUM_CLASSES_PAD), lambda i: (0, 0)),
                pl.BlockSpec((1, NUM_CLASSES_PAD), lambda i: (0, 0)),
            ],
            out_specs=pl.BlockSpec((TILE_B, NUM_CLASSES_PAD), lambda i: (i, 0)),
        ),
        compiler_params=pltpu.CompilerParams(
            dimension_semantics=("parallel",)),
    )(*inputs)

    return out[:b, :NUM_CLASSES]


# ------------------------ pure-JAX reference (unfused order) -------------------
def clip_finetuner_reference(x, params):
    b, c, h, w = x.shape
    gh, gw = h // PATCH, w // PATCH
    patches = x.reshape(b, c, gh, PATCH, gw, PATCH)
    patches = patches.transpose(0, 2, 4, 1, 3, 5).reshape(b, gh * gw, c * PATCH * PATCH)
    emb = jnp.einsum("bpd,dh->bph", patches, params["we"]) + params["be"]
    pooled = jnp.mean(emb, axis=1)
    mu = jnp.mean(pooled, axis=-1, keepdims=True)
    var = jnp.mean((pooled - mu) ** 2, axis=-1, keepdims=True)
    normed = (pooled - mu) * jax.lax.rsqrt(var + 1e-5)
    normed = normed * params["gamma"] + params["beta"]
    features = (normed @ params["wp"]).astype(jnp.float32)
    return features @ params["wc"].T + params["bc"]


# ------------------------- deterministic parameter init ------------------------
def init_params(key):
    ks = jax.random.split(key, 6)
    scale = 0.02
    return {
        # frozen synthetic encoder
        "we":    jax.random.normal(ks[0], (D_PATCH, WIDTH), jnp.float32) * scale,
        "be":    jax.random.normal(ks[1], (WIDTH,), jnp.float32) * scale,
        "gamma": jnp.ones((WIDTH,), jnp.float32),
        "beta":  jnp.zeros((WIDTH,), jnp.float32),
        "wp":    jax.random.normal(ks[2], (WIDTH, OUTPUT_DIM), jnp.float32) * scale,
        # trainable classifier: nn.Linear(OUTPUT_DIM, NUM_CLASSES)
        "wc":    jax.random.normal(ks[3], (NUM_CLASSES, OUTPUT_DIM), jnp.float32) * scale,
        "bc":    jax.random.normal(ks[4], (NUM_CLASSES,), jnp.float32) * scale,
    }


if __name__ == "__main__":
    key = jax.random.PRNGKey(0)
    k_x, k_p = jax.random.split(key)
    x = jax.random.normal(k_x, (B, C, H, W), jnp.float32)   # NCHW like PyTorch
    params = init_params(k_p)

    logits = clip_finetuner_forward(x, params)
    jax.block_until_ready(logits)

    assert logits.shape == (B, NUM_CLASSES), logits.shape
    assert logits.dtype == jnp.float32

    ref = clip_finetuner_reference(x, params)
    assert jnp.allclose(logits, ref, atol=1e-3, rtol=1e-3), (
        float(jnp.max(jnp.abs(logits - ref))))

    print("KERNEL_OK")
</pallas_src>

<mosaic_0001>
module attributes {stable_mosaic.version = 11 : i64} {
  func.func @clip_finetuner_kernel(%arg0: i32, %arg1: memref<8x4x192xf32, #tpu.memory_space<vmem>>, %arg2: memref<192x64xf32, #tpu.memory_space<vmem>>, %arg3: memref<1x64xf32, #tpu.memory_space<vmem>>, %arg4: memref<1x64xf32, #tpu.memory_space<vmem>>, %arg5: memref<1x64xf32, #tpu.memory_space<vmem>>, %arg6: memref<64x128xf32, #tpu.memory_space<vmem>>, %arg7: memref<1x128xf32, #tpu.memory_space<vmem>>, %arg8: memref<8x128xf32, #tpu.memory_space<vmem>>) attributes {dimension_semantics = [#tpu.dimension_semantics<parallel>], iteration_bounds = array<i64: 1>, scalar_prefetch = 0 : i64, scratch_operands = 0 : i64, tpu.core_type = #tpu.core_type<tc>, window_params = [{transform_indices = @transform_0, window_bounds = array<i64: 8, 4, 192>}, {pipeline_mode = #tpu.pipeline_mode<synchronous>, transform_indices = @transform_1, window_bounds = array<i64: 192, 64>}, {pipeline_mode = #tpu.pipeline_mode<synchronous>, transform_indices = @transform_2, window_bounds = array<i64: 1, 64>}, {pipeline_mode = #tpu.pipeline_mode<synchronous>, transform_indices = @transform_3, window_bounds = array<i64: 1, 64>}, {pipeline_mode = #tpu.pipeline_mode<synchronous>, transform_indices = @transform_4, window_bounds = array<i64: 1, 64>}, {pipeline_mode = #tpu.pipeline_mode<synchronous>, transform_indices = @transform_5, window_bounds = array<i64: 64, 128>}, {pipeline_mode = #tpu.pipeline_mode<synchronous>, transform_indices = @transform_6, window_bounds = array<i64: 1, 128>}, {transform_indices = @transform_7, window_bounds = array<i64: 8, 128>}]} {
    %c0 = arith.constant 0 : index
    %c0_0 = arith.constant 0 : index
    %c0_1 = arith.constant 0 : index
    %0 = vector.load %arg1[%c0, %c0_0, %c0_1] : memref<8x4x192xf32, #tpu.memory_space<vmem>>, vector<8x4x192xf32>
    %cst = arith.constant dense<0.000000e+00> : vector<8x192xf32>
    %1 = vector.multi_reduction <add>, %0, %cst [1] : vector<8x4x192xf32> to vector<8x192xf32>
    %cst_2 = arith.constant 4.000000e+00 : f32
    %2 = vector.broadcast %cst_2 : f32 to vector<8x192xf32>
    %3 = arith.divf %1, %2 : vector<8x192xf32>
    %c0_3 = arith.constant 0 : index
    %c0_4 = arith.constant 0 : index
    %4 = vector.load %arg2[%c0_3, %c0_4] : memref<192x64xf32, #tpu.memory_space<vmem>>, vector<192x64xf32>
    %cst_5 = arith.constant dense<0.000000e+00> : vector<8x64xf32>
    %5 = tpu.matmul %3, %4, %cst_5 {dimension_numbers = #tpu.dot_dimension_numbers<[1], [0], [0], [1], [0, 0, 1, 1], [], []>} : vector<8x192xf32>, vector<192x64xf32>, vector<8x64xf32> -> vector<8x64xf32>
    %c0_6 = arith.constant 0 : index
    %c0_7 = arith.constant 0 : index
    %6 = vector.load %arg3[%c0_6, %c0_7] : memref<1x64xf32, #tpu.memory_space<vmem>>, vector<1x64xf32>
    %7 = vector.broadcast %6 : vector<1x64xf32> to vector<8x64xf32>
    %8 = arith.addf %5, %7 : vector<8x64xf32>
    %cst_8 = arith.constant dense<0.000000e+00> : vector<8xf32>
    %9 = vector.multi_reduction <add>, %8, %cst_8 [1] : vector<8x64xf32> to vector<8xf32>
    %10 = vector.shape_cast %9 : vector<8xf32> to vector<8x1xf32>
    %cst_9 = arith.constant 6.400000e+01 : f32
    %11 = vector.broadcast %cst_9 : f32 to vector<8x1xf32>
    %12 = arith.divf %10, %11 : vector<8x1xf32>
    %13 = vector.broadcast %12 : vector<8x1xf32> to vector<8x64xf32>
    %14 = arith.subf %8, %13 : vector<8x64xf32>
    %15 = arith.mulf %14, %14 : vector<8x64xf32>
    %cst_10 = arith.constant dense<0.000000e+00> : vector<8xf32>
    %16 = vector.multi_reduction <add>, %15, %cst_10 [1] : vector<8x64xf32> to vector<8xf32>
    %17 = vector.shape_cast %16 : vector<8xf32> to vector<8x1xf32>
    %cst_11 = arith.constant 6.400000e+01 : f32
    %18 = vector.broadcast %cst_11 : f32 to vector<8x1xf32>
    %19 = arith.divf %17, %18 : vector<8x1xf32>
    %20 = vector.broadcast %12 : vector<8x1xf32> to vector<8x64xf32>
    %21 = arith.subf %8, %20 : vector<8x64xf32>
    %cst_12 = arith.constant 9.99999974E-6 : f32
    %22 = vector.broadcast %cst_12 : f32 to vector<8x1xf32>
    %23 = arith.addf %19, %22 : vector<8x1xf32>
    %24 = math.rsqrt %23 : vector<8x1xf32>
    %25 = vector.broadcast %24 : vector<8x1xf32> to vector<8x64xf32>
    %26 = arith.mulf %21, %25 : vector<8x64xf32>
    %c0_13 = arith.constant 0 : index
    %c0_14 = arith.constant 0 : index
    %27 = vector.load %arg4[%c0_13, %c0_14] : memref<1x64xf32, #tpu.memory_space<vmem>>, vector<1x64xf32>
    %28 = vector.broadcast %27 : vector<1x64xf32> to vector<8x64xf32>
    %29 = arith.mulf %26, %28 : vector<8x64xf32>
    %c0_15 = arith.constant 0 : index
    %c0_16 = arith.constant 0 : index
    %30 = vector.load %arg5[%c0_15, %c0_16] : memref<1x64xf32, #tpu.memory_space<vmem>>, vector<1x64xf32>
    %31 = vector.broadcast %30 : vector<1x64xf32> to vector<8x64xf32>
    %32 = arith.addf %29, %31 : vector<8x64xf32>
    %c0_17 = arith.constant 0 : index
    %c0_18 = arith.constant 0 : index
    %33 = vector.load %arg6[%c0_17, %c0_18] : memref<64x128xf32, #tpu.memory_space<vmem>>, vector<64x128xf32>
    %cst_19 = arith.constant dense<0.000000e+00> : vector<8x128xf32>
    %34 = tpu.matmul %32, %33, %cst_19 {dimension_numbers = #tpu.dot_dimension_numbers<[1], [0], [0], [1], [0, 0, 1, 1], [], []>} : vector<8x64xf32>, vector<64x128xf32>, vector<8x128xf32> -> vector<8x128xf32>
    %c0_20 = arith.constant 0 : index
    %c0_21 = arith.constant 0 : index
    %35 = vector.load %arg7[%c0_20, %c0_21] : memref<1x128xf32, #tpu.memory_space<vmem>>, vector<1x128xf32>
    %36 = vector.broadcast %35 : vector<1x128xf32> to vector<8x128xf32>
    %37 = arith.addf %34, %36 : vector<8x128xf32>
    %c0_22 = arith.constant 0 : index
    %c0_23 = arith.constant 0 : index
    %38 = vector.load %arg8[%c0_22, %c0_23] : memref<8x128xf32, #tpu.memory_space<vmem>>, vector<8x128xf32>
    tpu.vector_store %arg8[%c0_22, %c0_23], %37 {strides = array<i32>} : memref<8x128xf32, #tpu.memory_space<vmem>>, vector<8x128xf32>,
    return
  }
  func.func @transform_0(%arg0: i32) -> (i32, i32, i32) {
    %c0_i32 = arith.constant 0 : i32
    %c0_i32_0 = arith.constant 0 : i32
    %c0_i32_1 = arith.constant 0 : i32
    return %arg0, %c0_i32, %c0_i32_0 : i32, i32, i32
  }
  func.func @transform_1(%arg0: i32) -> (i32, i32) {
    %c0_i32 = arith.constant 0 : i32
    %c0_i32_0 = arith.constant 0 : i32
    %c0_i32_1 = arith.constant 0 : i32
    return %c0_i32, %c0_i32_0 : i32, i32
  }
  func.func @transform_2(%arg0: i32) -> (i32, i32) {
    %c0_i32 = arith.constant 0 : i32
    %c0_i32_0 = arith.constant 0 : i32
    %c0_i32_1 = arith.constant 0 : i32
    return %c0_i32, %c0_i32_0 : i32, i32
  }
  func.func @transform_3(%arg0: i32) -> (i32, i32) {
    %c0_i32 = arith.constant 0 : i32
    %c0_i32_0 = arith.constant 0 : i32
    %c0_i32_1 = arith.constant 0 : i32
    return %c0_i32, %c0_i32_0 : i32, i32
  }
  func.func @transform_4(%arg0: i32) -> (i32, i32) {
    %c0_i32 = arith.constant 0 : i32
    %c0_i32_0 = arith.constant 0 : i32
    %c0_i32_1 = arith.constant 0 : i32
    return %c0_i32, %c0_i32_0 : i32, i32
  }
  func.func @transform_5(%arg0: i32) -> (i32, i32) {
    %c0_i32 = arith.constant 0 : i32
    %c0_i32_0 = arith.constant 0 : i32
    %c0_i32_1 = arith.constant 0 : i32
    return %c0_i32, %c0_i32_0 : i32, i32
  }
  func.func @transform_6(%arg0: i32) -> (i32, i32) {
    %c0_i32 = arith.constant 0 : i32
    %c0_i32_0 = arith.constant 0 : i32
    %c0_i32_1 = arith.constant 0 : i32
    return %c0_i32, %c0_i32_0 : i32, i32
  }
  func.func @transform_7(%arg0: i32) -> (i32, i32) {
    %c0_i32 = arith.constant 0 : i32
    %c0_i32_0 = arith.constant 0 : i32
    return %arg0, %c0_i32 : i32, i32
  }
}

</mosaic_0001>

<bundles_post_ra>
// kernel: tpu_custom_call.1
= control target key start
LH: loop header
LB: loop body
LE: loop exit
PB: predicated region body
PF: predicated region fallthrough
CT: control target
= control target key end

     0   :  { %v585_v3 = vmov 0.0|0.0   ;;  %vm67_vm0 = vcmask 519168   ;;  %vm59_vm1 = vcmask 1043456   ;;  %s924_s0 = inlined_call_operand.vmem [shape: f32[8,4,192], index: 0, kind: input, shape index: {}]   ;;  %s925_s1 = inlined_call_operand.vmem [shape: f32[192,64], index: 1, kind: input, shape index: {}]   ;;  %s926_s2 = inlined_call_operand.vmem [shape: f32[1,64], index: 2, kind: input, shape index: {}]   ;;  %s927_s3 = inlined_call_operand.vmem [shape: f32[1,64], index: 3, kind: input, shape index: {}]   ;;  %s928_s4 = inlined_call_operand.vmem [shape: f32[1,64], index: 4, kind: input, shape index: {}]   ;;  %s929_s5 = inlined_call_operand.vmem [shape: f32[64,128], index: 5, kind: input, shape index: {}]   ;;  %s930_s6 = inlined_call_operand.vmem [shape: f32[1,128], index: 6, kind: input, shape index: {}]   ;;  %s931_s7 = inlined_call_operand.hbm [shape: f32[8,128], index: 7, kind: output, shape index: {}]  }
   0x1   :  { %v190_v0 = vld [vmem:[%s925_s1] sm:$0xff]  ;;  %v191_v1 = vld [vmem:[%s925_s1 + $0x8] sm:$0xff]  ;;  %v192_v2 = vld [vmem:[%s925_s1 + $0x10] sm:$0xff]  ;;  %499 = vmatprep.subr.bf16.mxu0 %v585_v3  ;;  %535 = vmatprep.subr.bf16.mxu1 %v585_v3 }
   0x2   :  { %v500_v4 = vpack.c.bf16 %v191_v1, %v190_v0  ;;  %v193_v5 = vld [vmem:[%s925_s1 + $0x18] sm:$0xff]  ;;  %v194_v6 = vld [vmem:[%s925_s1 + $0x20] sm:$0xff]  ;;  %v195_v7 = vld [vmem:[%s925_s1 + $0x28] sm:$0xff] }
   0x3   :  { %v652_v8 = vld [vmem:[%s925_s1 + $0x30] sm:$0xff]  ;;  %v657_v9 = vld [vmem:[%s925_s1 + $0x38] sm:$0xff]  ;;  %v662_v10 = vld [vmem:[%s925_s1 + $0x40] sm:$0xff]  ;;  %v503_v11 = vpack.c.bf16 %v193_v5, %v192_v2  ;;  %v506_v23 = vpack.c.bf16 %v195_v7, %v194_v6 }
   0x4   :  { %501 = vmatpush1.bf16.msra.mxu0 %v500_v4  ;;  %v667_v12 = vld [vmem:[%s925_s1 + $0x48] sm:$0xff]  ;;  %v672_v13 = vld [vmem:[%s925_s1 + $0x50] sm:$0xff]  ;;  %v677_v14 = vld [vmem:[%s925_s1 + $0x58] sm:$0xff]  ;;  %v509_v24 = vpack.c.bf16 %v657_v9, %v652_v8 }
   0x5   :  { %502 = vmatprep.subr.bf16.mxu0 %v585_v3  ;;  %v683_v15 = vld [vmem:[%s925_s1 + $0x60] sm:$0xff]  ;;  %v688_v16 = vld [vmem:[%s925_s1 + $0x68] sm:$0xff]  ;;  %v693_v17 = vld [vmem:[%s925_s1 + $0x70] sm:$0xff]  ;;  %v512_v25 = vpack.c.bf16 %v667_v12, %v662_v10  ;;  %v515_v26 = vpack.c.bf16 %v677_v14, %v672_v13 }
   0x6   :  { %v698_v18 = vld [vmem:[%s925_s1 + $0x78] sm:$0xff]  ;;  %v703_v19 = vld [vmem:[%s925_s1 + $0x80] sm:$0xff]  ;;  %v708_v20 = vld [vmem:[%s925_s1 + $0x88] sm:$0xff]  ;;  %v518_v27 = vpack.c.bf16 %v688_v16, %v683_v15 }
   0x7   :  { %v713_v21 = vld [vmem:[%s925_s1 + $0x90] sm:$0xff]  ;;  %v718_v22 = vld [vmem:[%s925_s1 + $0x98] sm:$0xff]  ;;  %v521_v28 = vpack.c.bf16 %v698_v18, %v693_v17  ;;  %v524_v29 = vpack.c.bf16 %v708_v20, %v703_v19  ;;  %v27_v31 = vld [vmem:[%s924_s0] sm:$0xff] }
   0x8   :  { %504 = vmatpush1.bf16.msra.mxu0 %v503_v11  ;;  %v527_v30 = vpack.c.bf16 %v718_v22, %v713_v21  ;;  %v741_v32 = vld [vmem:[%s924_s0 + $0x8] sm:$0xff]  ;;  %v746_v33 = vld [vmem:[%s924_s0 + $0x10] sm:$0xff]  ;;  %v751_v34 = vld [vmem:[%s924_s0 + $0x18] sm:$0xff]  ;;  %v43_v37 = vcombine.high %v27_v31, %v27_v31  ;;  %v768_v40 = vsel %vm59_vm1, %v27_v31, 0.0 }
   0x9   :  { %505 = vmatprep.subr.bf16.mxu0 %v585_v3  ;;  %v756_v35 = vld [vmem:[%s924_s0 + $0x20] sm:$0xff]  ;;  %v761_v36 = vld [vmem:[%s924_s0 + $0x28] sm:$0xff]  ;;  %v44_v38 = vcombine.high %v741_v32, %v741_v32  ;;  %v45_v39 = vcombine.high %v746_v33, %v746_v33  ;;  %v773_v41 = vld [vmem:[%s924_s0 + $0x30] sm:$0xff]  ;;  %v46_v43 = vcombine.high %v751_v34, %v751_v34  ;;  %v61_v46 = vrot.slane %v768_v40, 4 }
   0xa   :  { %v778_v42 = vld [vmem:[%s924_s0 + $0x38] sm:$0xff]  ;;  %v47_v44 = vcombine.high %v756_v35, %v756_v35  ;;  %v48_v45 = vcombine.high %v761_v36, %v761_v36  ;;  %v49_v47 = vcombine.high %v773_v41, %v773_v41  ;;  %v68_v49 = vsel %vm67_vm0, %v43_v37, 0.0 }
   0xb   :  { %v50_v48 = vcombine.high %v778_v42, %v778_v42  ;;  %v82_v50 = vsel %vm67_vm0, %v44_v38, 0.0 }
   0xc   :  { %507 = vmatpush1.bf16.msra.mxu0 %v506_v23 }
   0xd   :  { %12 = vsyncpa [#allocation3], 0  ;;  %508 = vmatprep.subr.bf16.mxu0 %v585_v3  ;;  %v69_v51 = vrot.slane %v68_v49, 4  ;;  %v83_v52 = vrot.slane %v82_v50, 4  ;;  %v96_v53 = vsel %vm67_vm0, %v45_v39, 0.0  ;;  %v110_v54 = vsel %vm67_vm0, %v46_v43, 0.0 }
   0xe   :  { %v97_v55 = vrot.slane %v96_v53, 4  ;;  %v111_v56 = vrot.slane %v110_v54, 4  ;;  %v124_v57 = vsel %vm67_vm0, %v47_v44, 0.0  ;;  %v138_v58 = vsel %vm67_vm0, %v48_v45, 0.0  ;;  %s588_s15 = smov [#allocation2]  }
   0xf   :  { %v70_v59 = vadd.f32 %v69_v51, %v68_v49  ;;  %v84_v60 = vadd.f32 %v83_v52, %v82_v50  ;;  %v125_v61 = vrot.slane %v124_v57, 4  ;;  %v139_v62 = vrot.slane %v138_v58, 4  ;;  %s457_s16 = sshll.u32 %s588_s15, 4  ;;  %s458_s16 = int_to_ptr.vmem [resolvable:$true] %s457_s16 }
  0x10   :  { %510 = vmatpush1.bf16.msra.mxu0 %v509_v24  ;;  %v98_v63 = vadd.f32 %v97_v55, %v96_v53  ;;  %v112_v0 = vadd.f32 %v111_v56, %v110_v54  ;;  %v152_v1 = vsel %vm67_vm0, %v49_v47, 0.0  ;;  %v166_v2 = vsel %vm67_vm0, %v50_v48, 0.0  ;;  %p566_p1 = scmp.lt.s32.totalorder %s458_s16, %s458_s16 }
  0x11   :  { %vm237_vm2 = vcmask 1041409   ;;  %511 = vmatprep.subr.bf16.mxu0 %v585_v3  ;;  %v71_v4 = vrot.slane %v70_v59, 2  ;;  %v85_v5 = vrot.slane %v84_v60, 2  ;;  %v126_v6 = vadd.f32 %v125_v61, %v124_v57 }
  0x12   :  { %v140_v7 = vadd.f32 %v139_v62, %v138_v58  ;;  %vm239_vm3 = vcmask 1042434   ;;  %v99_v8 = vrot.slane %v98_v63, 2  ;;  %v113_v9 = vrot.slane %v112_v0, 2 }
  0x13   :  { %v153_v11 = vrot.slane %v152_v1, 4  ;;  %v167_v23 = vrot.slane %v166_v2, 4  ;;  %vm241_vm4 = vcmask 1043459   ;;  %v72_v24 = vadd.f32 %v71_v4, %v70_v59 }
  0x14   :  { %v86_v31 = vadd.f32 %v85_v5, %v84_v60  ;;  %v127_v37 = vrot.slane %v126_v6, 2  ;;  %v141_v38 = vrot.slane %v140_v7, 2  ;;  %vm243_vm5 = vcmask 1044484   ;;  %513 = vmatpush1.bf16.msra.mxu0 %v512_v25 }
  0x15   :  { %v100_v39 = vadd.f32 %v99_v8, %v98_v63  ;;  %v114_v43 = vadd.f32 %v113_v9, %v112_v0  ;;  %v154_v44 = vadd.f32 %v153_v11, %v152_v1  ;;  %v168_v45 = vadd.f32 %v167_v23, %v166_v2  ;;  %514 = vmatprep.subr.bf16.mxu0 %v585_v3 }
  0x16   :  { %vm245_vm6 = vcmask 1045509   ;;  %v73_v47 = vrot.slane %v72_v24, 1  ;;  %v87_v48 = vrot.slane %v86_v31, 1  ;;  %v128_v49 = vadd.f32 %v127_v37, %v126_v6 }
  0x17   :  { %v142_v50 = vadd.f32 %v141_v38, %v140_v7  ;;  %vm247_vm7 = vcmask 1046534   ;;  %v101_v51 = vrot.slane %v100_v39, 1  ;;  %v115_v52 = vrot.slane %v114_v43, 1 }
  0x18   :  { %v155_v53 = vrot.slane %v154_v44, 2  ;;  %v169_v54 = vrot.slane %v168_v45, 2  ;;  %vm249_vm8 = vcmask 1047559   ;;  %v74_v55 = vadd.f32 %v73_v47, %v72_v24  ;;  %516 = vmatpush1.bf16.msra.mxu0 %v515_v26 }
  0x19   :  { %v88_v10 = vadd.f32 %v87_v48, %v86_v31  ;;  %v129_v12 = vrot.slane %v128_v49, 1  ;;  %v143_v25 = vrot.slane %v142_v50, 1  ;;  %vm259_vm9 = vcmask 523264   ;;  %517 = vmatprep.subr.bf16.mxu0 %v585_v3 }
  0x1a   :  { %v102_v56 = vadd.f32 %v101_v51, %v100_v39  ;;  %v116_v57 = vadd.f32 %v115_v52, %v114_v43  ;;  %v156_v58 = vadd.f32 %v155_v53, %v154_v44  ;;  %v170_v59 = vadd.f32 %v169_v54, %v168_v45 }
  0x1b   :  { %v130_v60 = vadd.f32 %v129_v12, %v128_v49  ;;  %v144_v61 = vadd.f32 %v143_v25, %v142_v50  ;;  %v175_v62 = vmul.f32 0.25, %v74_v55  ;;  %v177_v63 = vmul.f32 0.25, %v88_v10 }
  0x1c   :  { %v157_v0 = vrot.slane %v156_v58, 1  ;;  %v171_v1 = vrot.slane %v170_v59, 1  ;;  %v179_v2 = vmul.f32 0.25, %v102_v56  ;;  %v181_v4 = vmul.f32 0.25, %v116_v57  ;;  %519 = vmatpush1.bf16.msra.mxu0 %v518_v27 }
  0x1d   :  { %v183_v5 = vmul.f32 0.25, %v130_v60  ;;  %v185_v6 = vmul.f32 0.25, %v144_v61  ;;  %v251_v7 = vsel %vm237_vm2, %v177_v63, %v175_v62  ;;  %v62_v13 = vadd.f32 %v61_v46, %v768_v40  ;;  %520 = vmatprep.subr.bf16.mxu0 %v585_v3 }
  0x1e   :  { %v158_v14 = vadd.f32 %v157_v0, %v156_v58  ;;  %v172_v26 = vadd.f32 %v171_v1, %v170_v59  ;;  %v252_v8 = vsel %vm239_vm3, %v179_v2, %v251_v7  ;;  %v75_v9 = vsel %vm59_vm1, %v741_v32, 0.0  ;;  %v212_v2 = vld [vmem:[%s925_s1 + $0xb0] sm:$0xff] }
  0x1f   :  { %v253_v11 = vsel %vm241_vm4, %v181_v4, %v252_v8  ;;  %v63_v23 = vrot.slane %v62_v13, 2  ;;  %v76_v24 = vrot.slane %v75_v9, 4  ;;  %v89_v40 = vsel %vm59_vm1, %v746_v33, 0.0  ;;  %v213_v4 = vld [vmem:[%s925_s1 + $0xb8] sm:$0xff] }
  0x20   :  { %v187_v46 = vmul.f32 0.25, %v158_v14  ;;  %v189_v31 = vmul.f32 0.25, %v172_v26  ;;  %v254_v15 = vsel %vm243_vm5, %v183_v5, %v253_v11  ;;  %v90_v16 = vrot.slane %v89_v40, 4  ;;  %522 = vmatpush1.bf16.msra.mxu0 %v521_v28 }
  0x21   :  { %v255_v27 = vsel %vm245_vm6, %v185_v6, %v254_v15  ;;  %v64_v37 = vadd.f32 %v63_v23, %v62_v13  ;;  %v77_v38 = vadd.f32 %v76_v24, %v75_v9  ;;  %v103_v32 = vsel %vm59_vm1, %v751_v34, 0.0  ;;  %523 = vmatprep.subr.bf16.mxu0 %v585_v3 }
  0x22   :  { %v256_v39 = vsel %vm247_vm7, %v187_v46, %v255_v27  ;;  %v91_v43 = vadd.f32 %v90_v16, %v89_v40  ;;  %v104_v33 = vrot.slane %v103_v32, 4  ;;  %v117_v44 = vsel %vm59_vm1, %v756_v35, 0.0 }
  0x23   :  { %v257_v45 = vsel %vm249_vm8, %v189_v31, %v256_v39  ;;  %v65_v47 = vrot.slane %v64_v37, 1  ;;  %v78_v48 = vrot.slane %v77_v38, 2  ;;  %v118_v49 = vrot.slane %v117_v44, 4 }
  0x24   :  { %466 = vmatprep.mubr.msk.f32.mxu0 %vm259_vm9, %v257_v45  ;;  %v92_v34 = vrot.slane %v91_v43, 2  ;;  %v105_v50 = vadd.f32 %v104_v33, %v103_v32  ;;  %v131_v17 = vsel %vm59_vm1, %v761_v36, 0.0  ;;  %v145_v18 = vsel %vm59_vm1, %v773_v41, 0.0  ;;  %525 = vmatpush1.bf16.msra.mxu0 %v524_v29  ;;  %v210_v36 = vld [vmem:[%s925_s1 + $0xa0] sm:$0xff]  ;;  %v211_v41 = vld [vmem:[%s925_s1 + $0xa8] sm:$0xff] }
  0x25   :  { %v66_v28 = vadd.f32 %v65_v47, %v64_v37  ;;  %v79_v51 = vadd.f32 %v78_v48, %v77_v38  ;;  %v119_v35 = vadd.f32 %v118_v49, %v117_v44  ;;  %v132_v52 = vrot.slane %v131_v17, 4  ;;  %526 = vmatprep.subr.bf16.mxu0 %v585_v3  ;;  %v465_v47 = vld [vmem:[%s926_s2] ss:$0 sm:$0xff] }
  0x26   :  { %v93_v53 = vadd.f32 %v92_v34, %v91_v43  ;;  %v106_v54 = vrot.slane %v105_v50, 2  ;;  %v146_v55 = vrot.slane %v145_v18, 4  ;;  %v159_v10 = vsel %vm59_vm1, %v778_v42, 0.0 }
  0x27   :  { %v80_v12 = vrot.slane %v79_v51, 1  ;;  %v120_v25 = vrot.slane %v119_v35, 2  ;;  %v133_v19 = vadd.f32 %v132_v52, %v131_v17  ;;  %v160_v20 = vrot.slane %v159_v10, 4  ;;  %v362_v52 = vld [vmem:[%s929_s5] sm:$0xff] }
  0x28   :  { %v94_v29 = vrot.slane %v93_v53, 1  ;;  %v107_v56 = vadd.f32 %v106_v54, %v105_v50  ;;  %v147_v57 = vadd.f32 %v146_v55, %v145_v18  ;;  %v174_v58 = vmul.f32 0.25, %v66_v28  ;;  %528 = vmatpush1.bf16.msra.mxu0 %v527_v30  ;;  %v364_v55 = vld [vmem:[%s929_s5 + $0x10] sm:$0xff] }
  0x29   :  { %v81_v59 = vadd.f32 %v80_v12, %v79_v51  ;;  %v121_v42 = vadd.f32 %v120_v25, %v119_v35  ;;  %v134_v60 = vrot.slane %v133_v19, 2  ;;  %v161_v61 = vadd.f32 %v160_v20, %v159_v10  ;;  %529 = vmatprep.subr.bf16.mxu0 %v585_v3  ;;  %v365_v10 = vld [vmem:[%s929_s5 + $0x18] sm:$0xff]  ;;  %v366_v12 = vld [vmem:[%s929_s5 + $0x20] sm:$0xff]  ;;  %v367_v25 = vld [vmem:[%s929_s5 + $0x28] sm:$0xff] }
  0x2a   :  { %v530_v62 = vpack.c.bf16 %v211_v41, %v210_v36  ;;  %v95_v63 = vadd.f32 %v94_v29, %v93_v53  ;;  %v108_v0 = vrot.slane %v107_v56, 1  ;;  %v148_v1 = vrot.slane %v147_v57, 2  ;;  %v363_v53 = vld [vmem:[%s929_s5 + $0x8] sm:$0xff]  ;;  %v368_v20 = vld [vmem:[%s929_s5 + $0x30] sm:$0xff]  ;;  %v369_v29 = vld [vmem:[%s929_s5 + $0x38] sm:$0xff] }
  0x2b   :  { %v122_v5 = vrot.slane %v121_v42, 1  ;;  %v135_v6 = vadd.f32 %v134_v60, %v133_v19  ;;  %v162_v7 = vrot.slane %v161_v61, 2  ;;  %v176_v13 = vmul.f32 0.25, %v81_v59  ;;  %v467_v60 = vld [vmem:[%s927_s3] ss:$0 sm:$0xff]  ;;  %s561_s3 = scalar_lea.vmem %s458_s16, 128 }
  0x2c   :  { %v109_v21 = vadd.f32 %v108_v0, %v107_v56  ;;  %v149_v22 = vadd.f32 %v148_v1, %v147_v57  ;;  %v178_v30 = vmul.f32 0.25, %v95_v63  ;;  %531 = vmatpush1.bf16.msra.mxu0 %v530_v62  ;;  %v533_v11 = vpack.c.bf16 %v213_v4, %v212_v2  ;;  %v468_v62 = vld [vmem:[%s928_s4] ss:$0 sm:$0xff]  ;;  %p562_p0 = scmp.ne.s32.totalorder %s458_s16, %s561_s3  ;;  %p567_p2 = scmp.lt.s32.totalorder %s561_s3, %s561_s3 }
  0x2d   :  { %v123_v14 = vadd.f32 %v122_v5, %v121_v42  ;;  %v136_v26 = vrot.slane %v135_v6, 1  ;;  %v163_v8 = vadd.f32 %v162_v7, %v161_v61  ;;  %v238_v9 = vsel %vm237_vm2, %v176_v13, %v174_v58  ;;  %532 = vmatprep.subr.bf16.mxu0 %v585_v3 }
  0x2e   :  { %v150_v23 = vrot.slane %v149_v22, 1  ;;  %v180_v24 = vmul.f32 0.25, %v109_v21  ;;  %v240_v40 = vsel %vm239_vm3, %v178_v30, %v238_v9  ;;  %v536_v54 = vpack.c.bf16 %v363_v53, %v362_v52  ;;  %p568_p3 = por %p567_p2, %p566_p1 }
  0x2f   :  { %v137_v46 = vadd.f32 %v136_v26, %v135_v6  ;;  %v164_v31 = vrot.slane %v163_v8, 1  ;;  %v182_v15 = vmul.f32 0.25, %v123_v14  ;;  %vm586_vm10 = vmmov 0  }
  0x30   :  { %v151_v16 = vadd.f32 %v150_v23, %v149_v22  ;;  %v242_v27 = vsel %vm241_vm4, %v180_v24, %v240_v40  ;;  %534 = vmatpush1.bf16.msra.mxu0 %v533_v11  ;;  %v587_v36 = vmov 0.0   ;;  %537 = vmatpush3.bf16.msra.mxu1 %v536_v54  ;;  %v539_v41 = vpack.c.bf16 %v365_v10, %v364_v55  ;;  %p569_p4 = pnand %p568_p3, %p562_p0 }
  0x31   :  { %v165_v37 = vadd.f32 %v164_v31, %v163_v8  ;;  %v184_v38 = vmul.f32 0.25, %v137_v46  ;;  %v244_v32 = vsel %vm243_vm5, %v182_v15, %v242_v27  ;;  %496 = vmatprep.mubr.msk.f32.mxu1 %vm586_vm10, %v587_v36  ;;  %538 = vmatprep.subr.bf16.mxu1 %v585_v3  ;;  %v542_v19 = vpack.c.bf16 %v367_v25, %v366_v12 }
  0x32   :  { %v186_v39 = vmul.f32 0.25, %v151_v16  ;;  %v545_v56 = vpack.c.bf16 %v369_v29, %v368_v20 }
  0x33   :  { %v188_v43 = vmul.f32 0.25, %v165_v37  ;;  %v246_v33 = vsel %vm245_vm6, %v184_v38, %v244_v32 }
  0x34   :  { %v248_v44 = vsel %vm247_vm7, %v186_v39, %v246_v33  ;;  %540 = vmatpush3.bf16.msra.mxu1 %v539_v41 }
  0x35   :  { %v250_v45 = vsel %vm249_vm8, %v188_v43, %v248_v44  ;;  %541 = vmatprep.subr.bf16.mxu1 %v585_v3 }
  0x36   :  { %327 = vmatmul.mubr.f32.vlgmr.msra.gmra.mrb[0].mxu0 %v250_v45 }
  0x38   :  { %543 = vmatpush3.bf16.msra.mxu1 %v542_v19 }
  0x39   :  { %544 = vmatprep.subr.bf16.mxu1 %v585_v3  ;;  %v469_v3 = vld [vmem:[%s930_s6] ss:$0 sm:$0xff] }
  0x3c   :  { %546 = vmatpush3.bf16.msra.mxu1 %v545_v56 }
 0x109   :  { %v328_v48 = vpop.f32.mrb[0].mxu0 }
 0x10a   :  { %v329_v49 = vadd.f32 %v465_v47, %v328_v48  ;;  %v330_v34 = vpop.f32.mrb[1].mxu0 }
 0x10c   :  { %v332_v50 = vsel %vm259_vm9, %v329_v49, 0.0 }
 0x10d   :  { %333 = vadd.xlane.f32.xlu0 %v332_v50 }
 0x19a   :  { %v334_v17 = vpop.xlane.xlu0 %333 }
 0x19b   :  { %v336_v18 = vmul.f32 0.015625, %v334_v17 }
 0x19d   :  { %v337_v28 = vsub.f32 %v329_v49, %v336_v18 }
 0x19f   :  { %v338_v51 = vmul.f32 %v337_v28, %v337_v28 }
 0x1a1   :  { %v339_v35 = vsel %vm259_vm9, %v338_v51, 0.0 }
 0x1a2   :  { %340 = vadd.xlane.f32.xlu0 %v339_v35 }
 0x22f   :  { %v341_v57 = vpop.xlane.xlu0 %340 }
 0x230   :  { %v342_v58 = vmul.f32 0.015625, %v341_v57 }
 0x232   :  { %v343_v59 = vadd.f32 1e-05, %v342_v58 }
 0x234   :  { %559 = vrsqrt.f32 %v343_v59 }
 0x23e   :  { %v560_v42 = vpop.eup %559 }
 0x23f   :  { %v345_v61 = vmul.f32 %v560_v42, %v337_v28 }
 0x241   :  { %v353_v63 = vmul.f32 %v467_v60, %v345_v61 }
 0x243   :  { %v361_v0 = vadd.f32 %v468_v62, %v353_v63 }
 0x245   :  { %497 = vmatmul.mubr.msk.f32.vlgmr.msra.gmra.mrb[0].mxu1 %vm259_vm9, %v361_v0 }
 0x318   :  { %v446_v1 = vpop.f32.mrb[0].mxu1 }
 0x319   :  { %v447_v2 = vadd.f32 %v469_v3, %v446_v1  ;;  %v498_v4 = vpop.f32.mrb[1].mxu1 }
 0x31b   :  { %450 = vst [vmem:[#allocation2] sm:$0xff] %v447_v2 }
 0x31c   :  { %572 = shalt.err (!%p569_p4)
}
 0x31d   :  { %s573_s1 = scalar_lea.hbm %s931_s7, 128 }
 0x31e   :  { %p574_p5 = scmp.ne.s32.totalorder %s931_s7, %s573_s1  ;;  %p577_p6 = scmp.lt.u32.totalorder %s573_s1, %s931_s7 }
 0x320   :  { %p579_p7 = pnand %p577_p6, %p574_p5 }
 0x322   :  { %582 = shalt.err (!%p579_p7)
}
 0x323   :  { %460 = dma.vmem_to_hbm [thread:$0]  %s458_s16, 128, %s931_s7, [#allocation3]  }
 0x324   :  { %583 = dma.done.wait [#allocation3], 128  }
 0x325   :  { %584 = vsyncadd [#allocation3], 4294967168 }
 0x326   :  { %464 = vsyncpa [#allocation3], 1 }

</bundles_post_ra>
